<compile_context>
chip_gen: v7x
topology: tpu7x:2x2x1
jax: 0.10.0
libtpu: 0.0.40
codegen_flags: <defaults>
</compile_context>

<pallas_src>
import functools

import jax
import jax.numpy as jnp
from jax.experimental import pallas as pl
from jax.experimental.pallas import tpu as pltpu
import numpy as np


def lstm_ff_kernel(x_ref, wih0_ref, whh0_ref, b0_ref,
                   w1_ref, b1_ref, wfc_ref, bfc_ref, out_ref,
                   *, T, N, H):
    # ---- hoist all weight / bias loads out of the unrolled time loop ----
    whh0 = whh0_ref[...]          # (H, 4H)
    w1 = w1_ref[...]              # (2H, 4H) == [Wih1; Whh1]
    b1 = b1_ref[...]              # (1, 4H)  == bih1 + bhh1
    wfc = wfc_ref[...]            # (H, C)
    bfc = bfc_ref[...]            # (1, C)

    # ---- layer-0 input projection, hoisted: one (T*N, F)@(F, 4H) matmul ----
    xw0 = (jnp.dot(x_ref[...], wih0_ref[...],
                   preferred_element_type=jnp.float32)
           + b0_ref[...])                                    # (T*N, 4H)

    def gates_to_hc(gates, c):
        # One sigmoid + one tanh over the full 4H-lane tile, then slice.
        s = jax.nn.sigmoid(gates)
        tg = jnp.tanh(gates)
        i = s[:, 0:H]
        f = s[:, H:2 * H]
        g = tg[:, 2 * H:3 * H]
        o = s[:, 3 * H:4 * H]
        c_new = f * c + i * g
        h_new = o * jnp.tanh(c_new)
        return h_new, c_new

    # ---- recurrent state carried as values (no scratch round-trips) ----
    h0 = jnp.zeros((N, H), jnp.float32)
    c0 = jnp.zeros((N, H), jnp.float32)
    h1 = jnp.zeros((N, H), jnp.float32)
    c1 = jnp.zeros((N, H), jnp.float32)

    ys = []
    for t in range(T):                                       # static unroll
        # layer 0: hoisted xW0 slice + one (N,H)@(H,4H) recurrent matmul
        gates0 = xw0[t * N:(t + 1) * N, :] + jnp.dot(
            h0, whh0, preferred_element_type=jnp.float32)
        h0, c0 = gates_to_hc(gates0, c0)

        # layer 1: single fused (N,2H)@(2H,4H) matmul
        hcat = jnp.concatenate([h0, h1], axis=1)             # (N, 2H)
        gates1 = jnp.dot(hcat, w1,
                         preferred_element_type=jnp.float32) + b1
        h1, c1 = gates_to_hc(gates1, c1)

        # only batch row N-1 reaches the output (torch's x[:, -1])
        ys.append(h1[N - 1:N, :])                            # (1, H)

    # ---- deferred FC head: one matmul + one store ----
    y = jnp.maximum(jnp.concatenate(ys, axis=0), 0.0)        # (T, H)
    out_ref[...] = jnp.dot(y, wfc,
                           preferred_element_type=jnp.float32) + bfc


def lstm_ff_forward(x, seq_len, params):
    (wih0, whh0, bih0, bhh0,
     wih1, whh1, bih1, bhh1, wfc, bfc) = params
    B = x.shape[0]                                   # x_batch = x[:, 0].size()[0]
    x3 = x.reshape(B, seq_len, -1).astype(jnp.float32)       # (T, N, F)
    T, N, F = x3.shape
    H = whh0.shape[1]
    C = wfc.shape[0]

    # One-time weight prep in the wrapper: transpose, fuse biases, stack the
    # layer-1 input/recurrent weights for the fused per-step matmul.
    w1 = jnp.concatenate([wih1.T, whh1.T], axis=0)           # (2H, 4H)
    args = (
        x3.reshape(T * N, F),                                # (T*N, F)
        wih0.T,                                              # (F, 4H)
        whh0.T,                                              # (H, 4H)
        (bih0 + bhh0).reshape(1, 4 * H),
        w1,
        (bih1 + bhh1).reshape(1, 4 * H),
        wfc.T,                                               # (H, C)
        bfc.reshape(1, C),
    )

    vmem = pl.BlockSpec(memory_space=pltpu.MemorySpace.VMEM)
    out = pl.pallas_call(
        functools.partial(lstm_ff_kernel, T=T, N=N, H=H),
        out_shape=jax.ShapeDtypeStruct((T, C), jnp.float32),
        in_specs=[vmem] * len(args),
        out_specs=vmem,
    )(*args)
    return out


def lstm_ff_reference(x, seq_len, params):
    (wih0, whh0, bih0, bhh0,
     wih1, whh1, bih1, bhh1, wfc, bfc) = params
    B = x.shape[0]
    x3 = x.reshape(B, seq_len, -1).astype(jnp.float32)
    T, N, _ = x3.shape
    H = whh0.shape[1]

    def cell(x_t, h, c, wih, whh, bih, bhh):
        gates = x_t @ wih.T + bih + h @ whh.T + bhh
        i, f, g, o = jnp.split(gates, 4, axis=1)
        c = jax.nn.sigmoid(f) * c + jax.nn.sigmoid(i) * jnp.tanh(g)
        h = jax.nn.sigmoid(o) * jnp.tanh(c)
        return h, c

    h0 = c0 = h1 = c1 = jnp.zeros((N, H), jnp.float32)
    outs = []
    for t in range(T):
        h0, c0 = cell(x3[t], h0, c0, wih0, whh0, bih0, bhh0)
        h1, c1 = cell(h0, h1, c1, wih1, whh1, bih1, bhh1)
        outs.append(h1)
    y = jnp.stack(outs)                              # (T, N, H)
    y = jnp.maximum(y, 0.0) @ wfc.T + bfc            # fc1(relu(x))
    return y[:, -1]                                  # x[:, -1]


if __name__ == "__main__":
    key = jax.random.PRNGKey(0)
    B, seq_len, in_features = 2, 8, 16
    hidden, num_classes = 32, 8

    keys = jax.random.split(key, 11)
    bound = float(1.0 / np.sqrt(hidden))

    def u(k, shape):
        return jax.random.uniform(k, shape, jnp.float32, -bound, bound)

    params = (
        u(keys[0], (4 * hidden, in_features)),   # lstm.weight_ih_l0
        u(keys[1], (4 * hidden, hidden)),        # lstm.weight_hh_l0
        u(keys[2], (4 * hidden,)),               # lstm.bias_ih_l0
        u(keys[3], (4 * hidden,)),               # lstm.bias_hh_l0
        u(keys[4], (4 * hidden, hidden)),        # lstm.weight_ih_l1
        u(keys[5], (4 * hidden, hidden)),        # lstm.weight_hh_l1
        u(keys[6], (4 * hidden,)),               # lstm.bias_ih_l1
        u(keys[7], (4 * hidden,)),               # lstm.bias_hh_l1
        u(keys[8], (num_classes, hidden)),       # fc1.weight
        u(keys[9], (num_classes,)),              # fc1.bias
    )

    x = jax.random.normal(keys[10], (B, seq_len, in_features), jnp.float32)

    out = lstm_ff_forward(x, seq_len, params)
    out = jax.block_until_ready(out)

    ref = lstm_ff_reference(x, seq_len, params)
    assert out.shape == (B, num_classes), out.shape
    np.testing.assert_allclose(np.asarray(out), np.asarray(ref),
                               rtol=1e-5, atol=1e-5)
    print("KERNEL_OK")
</pallas_src>

<mosaic_0001>
module attributes {stable_mosaic.version = 11 : i64} {
  func.func @lstm_ff_kernel(%arg0: memref<16x16xf32, #tpu.memory_space<vmem>>, %arg1: memref<16x128xf32, #tpu.memory_space<vmem>>, %arg2: memref<32x128xf32, #tpu.memory_space<vmem>>, %arg3: memref<1x128xf32, #tpu.memory_space<vmem>>, %arg4: memref<64x128xf32, #tpu.memory_space<vmem>>, %arg5: memref<1x128xf32, #tpu.memory_space<vmem>>, %arg6: memref<32x8xf32, #tpu.memory_space<vmem>>, %arg7: memref<1x8xf32, #tpu.memory_space<vmem>>, %arg8: memref<2x8xf32, #tpu.memory_space<vmem>>) attributes {dimension_semantics = [], scalar_prefetch = 0 : i64, scratch_operands = 0 : i64, tpu.core_type = #tpu.core_type<tc>} {
    %c0 = arith.constant 0 : index
    %c0_0 = arith.constant 0 : index
    %0 = vector.load %arg2[%c0, %c0_0] : memref<32x128xf32, #tpu.memory_space<vmem>>, vector<32x128xf32>
    %c0_1 = arith.constant 0 : index
    %c0_2 = arith.constant 0 : index
    %1 = vector.load %arg4[%c0_1, %c0_2] : memref<64x128xf32, #tpu.memory_space<vmem>>, vector<64x128xf32>
    %c0_3 = arith.constant 0 : index
    %c0_4 = arith.constant 0 : index
    %2 = vector.load %arg5[%c0_3, %c0_4] : memref<1x128xf32, #tpu.memory_space<vmem>>, vector<1x128xf32>
    %c0_5 = arith.constant 0 : index
    %c0_6 = arith.constant 0 : index
    %3 = vector.load %arg6[%c0_5, %c0_6] : memref<32x8xf32, #tpu.memory_space<vmem>>, vector<32x8xf32>
    %c0_7 = arith.constant 0 : index
    %c0_8 = arith.constant 0 : index
    %4 = vector.load %arg7[%c0_7, %c0_8] : memref<1x8xf32, #tpu.memory_space<vmem>>, vector<1x8xf32>
    %c0_9 = arith.constant 0 : index
    %c0_10 = arith.constant 0 : index
    %5 = vector.load %arg0[%c0_9, %c0_10] : memref<16x16xf32, #tpu.memory_space<vmem>>, vector<16x16xf32>
    %c0_11 = arith.constant 0 : index
    %c0_12 = arith.constant 0 : index
    %6 = vector.load %arg1[%c0_11, %c0_12] : memref<16x128xf32, #tpu.memory_space<vmem>>, vector<16x128xf32>
    %cst = arith.constant dense<0.000000e+00> : vector<16x128xf32>
    %7 = tpu.matmul %5, %6, %cst {dimension_numbers = #tpu.dot_dimension_numbers<[1], [0], [0], [1], [0, 0, 1, 1], [], []>} : vector<16x16xf32>, vector<16x128xf32>, vector<16x128xf32> -> vector<16x128xf32>
    %c0_13 = arith.constant 0 : index
    %c0_14 = arith.constant 0 : index
    %8 = vector.load %arg3[%c0_13, %c0_14] : memref<1x128xf32, #tpu.memory_space<vmem>>, vector<1x128xf32>
    %9 = vector.broadcast %8 : vector<1x128xf32> to vector<16x128xf32>
    %10 = arith.addf %7, %9 : vector<16x128xf32>
    %cst_15 = arith.constant 0.000000e+00 : f32
    %11 = vector.broadcast %cst_15 : f32 to vector<8x32xf32>
    %cst_16 = arith.constant 0.000000e+00 : f32
    %12 = vector.broadcast %cst_16 : f32 to vector<8x32xf32>
    %cst_17 = arith.constant 0.000000e+00 : f32
    %13 = vector.broadcast %cst_17 : f32 to vector<8x32xf32>
    %cst_18 = arith.constant 0.000000e+00 : f32
    %14 = vector.broadcast %cst_18 : f32 to vector<8x32xf32>
    %15 = vector.extract_strided_slice %10 {offsets = [0, 0], sizes = [8, 128], strides = [1, 1]} : vector<16x128xf32> to vector<8x128xf32>
    %cst_19 = arith.constant dense<0.000000e+00> : vector<8x128xf32>
    %16 = tpu.matmul %11, %0, %cst_19 {dimension_numbers = #tpu.dot_dimension_numbers<[1], [0], [0], [1], [0, 0, 1, 1], [], []>} : vector<8x32xf32>, vector<32x128xf32>, vector<8x128xf32> -> vector<8x128xf32>
    %17 = arith.addf %15, %16 : vector<8x128xf32>
    %18 = arith.negf %17 : vector<8x128xf32>
    %19 = math.exp %18 : vector<8x128xf32>
    %cst_20 = arith.constant 1.000000e+00 : f32
    %20 = vector.broadcast %cst_20 : f32 to vector<8x128xf32>
    %21 = arith.addf %20, %19 : vector<8x128xf32>
    %22 = arith.divf %20, %21 : vector<8x128xf32>
    %23 = math.tanh %17 : vector<8x128xf32>
    %24 = vector.extract_strided_slice %22 {offsets = [0, 0], sizes = [8, 32], strides = [1, 1]} : vector<8x128xf32> to vector<8x32xf32>
    %25 = vector.extract_strided_slice %22 {offsets = [0, 32], sizes = [8, 32], strides = [1, 1]} : vector<8x128xf32> to vector<8x32xf32>
    %26 = vector.extract_strided_slice %23 {offsets = [0, 64], sizes = [8, 32], strides = [1, 1]} : vector<8x128xf32> to vector<8x32xf32>
    %27 = vector.extract_strided_slice %22 {offsets = [0, 96], sizes = [8, 32], strides = [1, 1]} : vector<8x128xf32> to vector<8x32xf32>
    %28 = arith.mulf %25, %12 : vector<8x32xf32>
    %29 = arith.mulf %24, %26 : vector<8x32xf32>
    %30 = arith.addf %28, %29 : vector<8x32xf32>
    %31 = math.tanh %30 : vector<8x32xf32>
    %32 = arith.mulf %27, %31 : vector<8x32xf32>
    %33 = tpu.concatenate %32, %13 in 1 : vector<8x32xf32>, vector<8x32xf32> -> vector<8x64xf32>
    %cst_21 = arith.constant dense<0.000000e+00> : vector<8x128xf32>
    %34 = tpu.matmul %33, %1, %cst_21 {dimension_numbers = #tpu.dot_dimension_numbers<[1], [0], [0], [1], [0, 0, 1, 1], [], []>} : vector<8x64xf32>, vector<64x128xf32>, vector<8x128xf32> -> vector<8x128xf32>
    %35 = vector.broadcast %2 : vector<1x128xf32> to vector<8x128xf32>
    %36 = arith.addf %34, %35 : vector<8x128xf32>
    %37 = arith.negf %36 : vector<8x128xf32>
    %38 = math.exp %37 : vector<8x128xf32>
    %cst_22 = arith.constant 1.000000e+00 : f32
    %39 = vector.broadcast %cst_22 : f32 to vector<8x128xf32>
    %40 = arith.addf %39, %38 : vector<8x128xf32>
    %41 = arith.divf %39, %40 : vector<8x128xf32>
    %42 = math.tanh %36 : vector<8x128xf32>
    %43 = vector.extract_strided_slice %41 {offsets = [0, 0], sizes = [8, 32], strides = [1, 1]} : vector<8x128xf32> to vector<8x32xf32>
    %44 = vector.extract_strided_slice %41 {offsets = [0, 32], sizes = [8, 32], strides = [1, 1]} : vector<8x128xf32> to vector<8x32xf32>
    %45 = vector.extract_strided_slice %42 {offsets = [0, 64], sizes = [8, 32], strides = [1, 1]} : vector<8x128xf32> to vector<8x32xf32>
    %46 = vector.extract_strided_slice %41 {offsets = [0, 96], sizes = [8, 32], strides = [1, 1]} : vector<8x128xf32> to vector<8x32xf32>
    %47 = arith.mulf %44, %14 : vector<8x32xf32>
    %48 = arith.mulf %43, %45 : vector<8x32xf32>
    %49 = arith.addf %47, %48 : vector<8x32xf32>
    %50 = math.tanh %49 : vector<8x32xf32>
    %51 = arith.mulf %46, %50 : vector<8x32xf32>
    %52 = vector.extract_strided_slice %51 {offsets = [7, 0], sizes = [1, 32], strides = [1, 1]} : vector<8x32xf32> to vector<1x32xf32>
    %53 = vector.extract_strided_slice %10 {offsets = [8, 0], sizes = [8, 128], strides = [1, 1]} : vector<16x128xf32> to vector<8x128xf32>
    %cst_23 = arith.constant dense<0.000000e+00> : vector<8x128xf32>
    %54 = tpu.matmul %32, %0, %cst_23 {dimension_numbers = #tpu.dot_dimension_numbers<[1], [0], [0], [1], [0, 0, 1, 1], [], []>} : vector<8x32xf32>, vector<32x128xf32>, vector<8x128xf32> -> vector<8x128xf32>
    %55 = arith.addf %53, %54 : vector<8x128xf32>
    %56 = arith.negf %55 : vector<8x128xf32>
    %57 = math.exp %56 : vector<8x128xf32>
    %cst_24 = arith.constant 1.000000e+00 : f32
    %58 = vector.broadcast %cst_24 : f32 to vector<8x128xf32>
    %59 = arith.addf %58, %57 : vector<8x128xf32>
    %60 = arith.divf %58, %59 : vector<8x128xf32>
    %61 = math.tanh %55 : vector<8x128xf32>
    %62 = vector.extract_strided_slice %60 {offsets = [0, 0], sizes = [8, 32], strides = [1, 1]} : vector<8x128xf32> to vector<8x32xf32>
    %63 = vector.extract_strided_slice %60 {offsets = [0, 32], sizes = [8, 32], strides = [1, 1]} : vector<8x128xf32> to vector<8x32xf32>
    %64 = vector.extract_strided_slice %61 {offsets = [0, 64], sizes = [8, 32], strides = [1, 1]} : vector<8x128xf32> to vector<8x32xf32>
    %65 = vector.extract_strided_slice %60 {offsets = [0, 96], sizes = [8, 32], strides = [1, 1]} : vector<8x128xf32> to vector<8x32xf32>
    %66 = arith.mulf %63, %30 : vector<8x32xf32>
    %67 = arith.mulf %62, %64 : vector<8x32xf32>
    %68 = arith.addf %66, %67 : vector<8x32xf32>
    %69 = math.tanh %68 : vector<8x32xf32>
    %70 = arith.mulf %65, %69 : vector<8x32xf32>
    %71 = tpu.concatenate %70, %51 in 1 : vector<8x32xf32>, vector<8x32xf32> -> vector<8x64xf32>
    %cst_25 = arith.constant dense<0.000000e+00> : vector<8x128xf32>
    %72 = tpu.matmul %71, %1, %cst_25 {dimension_numbers = #tpu.dot_dimension_numbers<[1], [0], [0], [1], [0, 0, 1, 1], [], []>} : vector<8x64xf32>, vector<64x128xf32>, vector<8x128xf32> -> vector<8x128xf32>
    %73 = vector.broadcast %2 : vector<1x128xf32> to vector<8x128xf32>
    %74 = arith.addf %72, %73 : vector<8x128xf32>
    %75 = arith.negf %74 : vector<8x128xf32>
    %76 = math.exp %75 : vector<8x128xf32>
    %cst_26 = arith.constant 1.000000e+00 : f32
    %77 = vector.broadcast %cst_26 : f32 to vector<8x128xf32>
    %78 = arith.addf %77, %76 : vector<8x128xf32>
    %79 = arith.divf %77, %78 : vector<8x128xf32>
    %80 = math.tanh %74 : vector<8x128xf32>
    %81 = vector.extract_strided_slice %79 {offsets = [0, 0], sizes = [8, 32], strides = [1, 1]} : vector<8x128xf32> to vector<8x32xf32>
    %82 = vector.extract_strided_slice %79 {offsets = [0, 32], sizes = [8, 32], strides = [1, 1]} : vector<8x128xf32> to vector<8x32xf32>
    %83 = vector.extract_strided_slice %80 {offsets = [0, 64], sizes = [8, 32], strides = [1, 1]} : vector<8x128xf32> to vector<8x32xf32>
    %84 = vector.extract_strided_slice %79 {offsets = [0, 96], sizes = [8, 32], strides = [1, 1]} : vector<8x128xf32> to vector<8x32xf32>
    %85 = arith.mulf %82, %49 : vector<8x32xf32>
    %86 = arith.mulf %81, %83 : vector<8x32xf32>
    %87 = arith.addf %85, %86 : vector<8x32xf32>
    %88 = math.tanh %87 : vector<8x32xf32>
    %89 = arith.mulf %84, %88 : vector<8x32xf32>
    %90 = vector.extract_strided_slice %89 {offsets = [7, 0], sizes = [1, 32], strides = [1, 1]} : vector<8x32xf32> to vector<1x32xf32>
    %91 = tpu.concatenate %52, %90 in 0 : vector<1x32xf32>, vector<1x32xf32> -> vector<2x32xf32>
    %cst_27 = arith.constant 0.000000e+00 : f32
    %92 = vector.broadcast %cst_27 : f32 to vector<2x32xf32>
    %93 = arith.maximumf %91, %92 : vector<2x32xf32>
    %cst_28 = arith.constant dense<0.000000e+00> : vector<2x8xf32>
    %94 = tpu.matmul %93, %3, %cst_28 {dimension_numbers = #tpu.dot_dimension_numbers<[1], [0], [0], [1], [0, 0, 1, 1], [], []>} : vector<2x32xf32>, vector<32x8xf32>, vector<2x8xf32> -> vector<2x8xf32>
    %95 = vector.broadcast %4 : vector<1x8xf32> to vector<2x8xf32>
    %96 = arith.addf %94, %95 : vector<2x8xf32>
    %c0_29 = arith.constant 0 : index
    %c0_30 = arith.constant 0 : index
    %97 = vector.load %arg8[%c0_29, %c0_30] : memref<2x8xf32, #tpu.memory_space<vmem>>, vector<2x8xf32>
    tpu.vector_store %arg8[%c0_29, %c0_30], %96 {strides = array<i32>} : memref<2x8xf32, #tpu.memory_space<vmem>>, vector<2x8xf32>,
    return
  }
}

</mosaic_0001>

<bundles_post_ra>
// kernel: tpu_custom_call.1
= control target key start
LH: loop header
LB: loop body
LE: loop exit
PB: predicated region body
PF: predicated region fallthrough
CT: control target
= control target key end

     0   :  { %13 = vsyncpa [#allocation3], 0  ;;  %s1220_s0 = inlined_call_operand.hbm [shape: f32[16,16], index: 0, kind: input, shape index: {}]   ;;  %s1221_s1 = inlined_call_operand.hbm [shape: f32[16,128], index: 1, kind: input, shape index: {}]   ;;  %s1222_s2 = inlined_call_operand.vmem [shape: f32[32,128], index: 2, kind: input, shape index: {}]   ;;  %s1223_s3 = inlined_call_operand.vmem [shape: f32[1,128], index: 3, kind: input, shape index: {}]   ;;  %s1224_s4 = inlined_call_operand.hbm [shape: f32[64,128], index: 4, kind: input, shape index: {}]   ;;  %s1225_s5 = inlined_call_operand.vmem [shape: f32[1,128], index: 5, kind: input, shape index: {}]   ;;  %s1226_s6 = inlined_call_operand.vmem [shape: f32[32,8], index: 6, kind: input, shape index: {}]   ;;  %s1227_s7 = inlined_call_operand.vmem [shape: f32[1,8], index: 7, kind: input, shape index: {}]   ;;  %s1228_s8 = inlined_call_operand.hbm [shape: f32[2,8], index: 8, kind: output, shape index: {}]  }
   0x1   :  { %14 = vsyncpa [#allocation6], 0 }
   0x2   :  { %15 = vsyncpa [#allocation4], 0  ;;  %s1011_s27 = smov [#allocation5]   ;;  %s1012_s29 = smov [#allocation2]  }
   0x3   :  { %s33_s28 = sshll.u32 %s1011_s27, 4  ;;  %s21_s30 = sshll.u32 %s1012_s29, 4  ;;  %s34_s28 = int_to_ptr.vmem [resolvable:$true] %s33_s28  ;;  %s1067_s30 = int_to_ptr.vmem [resolvable:$true] %s21_s30 }
   0x4   :  { %s917_s11 = scalar_lea.hbm %s1221_s1, 256 }
   0x5   :  { %p918_p0 = scmp.ne.s32.totalorder %s1221_s1, %s917_s11  ;;  %p921_p1 = scmp.lt.u32.totalorder %s917_s11, %s1221_s1 }
   0x7   :  { %p923_p2 = pnand %p921_p1, %p918_p0 }
   0x9   :  { %926 = shalt.err (!%p923_p2)
}
   0xa   :  { %s927_s16 = scalar_lea.vmem %s34_s28, 256  ;;  %p932_p4 = scmp.lt.s32.totalorder %s34_s28, %s34_s28 }
   0xb   :  { %p928_p3 = scmp.ne.s32.totalorder %s34_s28, %s927_s16  ;;  %p933_p5 = scmp.lt.s32.totalorder %s927_s16, %s927_s16 }
   0xd   :  { %p934_p6 = por %p933_p5, %p932_p4 }
   0xf   :  { %p935_p7 = pnand %p934_p6, %p928_p3 }
  0x11   :  { %938 = shalt.err (!%p935_p7)
}
  0x12   :  { %s1013_s17 = smov 128   ;;  %s1014_s18 = smov 8  }
  0x13   :  { %39 = dma.hbm_to_vmem [thread:$0]  %s1221_s1, 256, %s34_s28, [#allocation6], %s1013_s17, %s1013_s17, %s1014_s18  }
  0x14   :  { %s939_s23 = scalar_lea.hbm %s1220_s0, 256 }
  0x15   :  { %p940_p8 = scmp.ne.s32.totalorder %s1220_s0, %s939_s23  ;;  %p943_p9 = scmp.lt.u32.totalorder %s939_s23, %s1220_s0 }
  0x17   :  { %p945_p10 = pnand %p943_p9, %p940_p8 }
  0x19   :  { %948 = shalt.err (!%p945_p10)
}
  0x1a   :  { %s949_s29 = scalar_lea.vmem %s1067_s30, 256  ;;  %p954_p12 = scmp.lt.s32.totalorder %s1067_s30, %s1067_s30 }
  0x1b   :  { %p950_p11 = scmp.ne.s32.totalorder %s1067_s30, %s949_s29  ;;  %p955_p13 = scmp.lt.s32.totalorder %s949_s29, %s949_s29 }
  0x1d   :  { %p956_p0 = por %p955_p13, %p954_p12 }
  0x1f   :  { %p957_p1 = pnand %p956_p0, %p950_p11 }
  0x21   :  { %960 = shalt.err (!%p957_p1)
}
  0x22   :  { %27 = dma.hbm_to_vmem [thread:$0]  %s1220_s0, 256, %s1067_s30, [#allocation3], %s1013_s17, %s1013_s17, %s1014_s18  }
  0x23   :  { %s1015_s9 = smov [#allocation7]   ;;  %s961_s13 = scalar_lea.hbm %s1224_s4, 1024 }
  0x24   :  { %s49_s10 = sshll.u32 %s1015_s9, 4  ;;  %p962_p2 = scmp.ne.s32.totalorder %s1224_s4, %s961_s13  ;;  %s50_s10 = int_to_ptr.vmem [resolvable:$true] %s49_s10 }
  0x25   :  { %p965_p3 = scmp.lt.u32.totalorder %s961_s13, %s1224_s4 }
  0x27   :  { %p967_p4 = pnand %p965_p3, %p962_p2 }
  0x29   :  { %970 = shalt.err (!%p967_p4)
}
  0x2a   :  { %s971_s20 = scalar_lea.vmem %s50_s10, 1024  ;;  %p976_p6 = scmp.lt.s32.totalorder %s50_s10, %s50_s10 }
  0x2b   :  { %p972_p5 = scmp.ne.s32.totalorder %s50_s10, %s971_s20  ;;  %p977_p7 = scmp.lt.s32.totalorder %s971_s20, %s971_s20 }
  0x2d   :  { %p978_p8 = por %p977_p7, %p976_p6 }
  0x2f   :  { %p979_p9 = pnand %p978_p8, %p972_p5 }
  0x31   :  { %982 = shalt.err (!%p979_p9)
}
  0x32   :  { %55 = dma.hbm_to_vmem [thread:$0]  %s1224_s4, 1024, %s50_s10, [#allocation6], %s1013_s17, %s1013_s17, %s1014_s18  }
  0x33   :  { %1005 = dma.done.wait [#allocation3], 256  }
  0x34   :  { %1006 = vsyncadd [#allocation3], 4294967040 }
  0x35   :  { %1007 = dma.done.wait [#allocation6], 1280  }
  0x36   :  { %1008 = vsyncadd [#allocation6], 4294966016  ;;  %v1016_v0 = vmov 0.0|0.0   ;;  %vm1017_vm0 = vmmov 0   ;;  %v1018_v1 = vmov 0.0   ;;  %vm100_vm1 = vcmask 130048  }
  0x37   :  { %832 = vmatprep.subr.bf16.mxu1 %v1016_v0  ;;  %765 = vmatprep.mubr.msk.f32.mxu1 %vm1017_vm0, %v1018_v1  ;;  %v91_v2 = vld [vmem:[#allocation5] sm:$0xff]  ;;  %v92_v3 = vld [vmem:[#allocation5 + $0x8] sm:$0xff]  ;;  %v71_v4 = vld [vmem:[%s1222_s2] sm:$0xff]  ;;  %s1019_s27 = smov 64   ;;  %vm182_vm2 = vcmask 261120   ;;  %vm292_vm3 = vcmask 523264  }
  0x38   :  { %v828_v5 = vpack.c.bf16 %v92_v3, %v91_v2  ;;  %v72_v6 = vld [vmem:[%s1222_s2 + $0x8] sm:$0xff]  ;;  %v89_v7 = vld [vmem:[#allocation2] sm:$0xff]  ;;  %v73_v9 = vld [vmem:[%s1222_s2 + $0x10] sm:$0xff]  ;;  %vm598_vm4 = vcmask 1040384   ;;  %s1021_s16 = smov [#allocation8]   ;;  %vm682_vm5 = vcmask 58368  }
  0x39   :  { %v833_v8 = vpack.c.bf16 %v72_v6, %v71_v4  ;;  %754 = vmatprep.mubr.msk.f32.mxu0 %vm100_vm1, %v89_v7  ;;  %v74_v10 = vld [vmem:[%s1222_s2 + $0x18] sm:$0xff]  ;;  %v90_v11 = vld [vmem:[#allocation2 + $0x8] sm:$0xff]  ;;  %v700_v13 = vld [vmem:[%s1223_s3] ss:$0 sm:$0xff]  ;;  %s1020_s3 = smov 32   ;;  %s690_s19 = sshll.u32 %s1021_s16, 4  ;;  %s691_s19 = int_to_ptr.vmem [resolvable:$true] %s690_s19 }
  0x3a   :  { %829 = vmatprep.subr.bf16.mxu0 %v828_v5  ;;  %v836_v12 = vpack.c.bf16 %v74_v10, %v73_v9  ;;  %v75_v31 = vld [vmem:[#allocation7] sm:$0xff]  ;;  %v76_v32 = vld [vmem:[#allocation7 + $0x8] sm:$0xff]  ;;  %v77_v33 = vld [vmem:[#allocation7 + $0x10] sm:$0xff]  ;;  %s983_s20 = scalar_lea.vmem %s691_s19, 32  ;;  %p988_p11 = scmp.lt.s32.totalorder %s691_s19, %s691_s19 }
  0x3b   :  { %834 = vmatpush3.bf16.msra.mxu1 %v833_v8  ;;  %831 = vmatpush3.bf16.msra.mxu0 %v828_v5  ;;  %v839_v34 = vpack.c.bf16 %v76_v32, %v75_v31  ;;  %v78_v35 = vld [vmem:[#allocation7 + $0x18] sm:$0xff]  ;;  %v79_v37 = vld [vmem:[#allocation7 + $0x20] sm:$0xff]  ;;  %v80_v38 = vld [vmem:[#allocation7 + $0x28] sm:$0xff]  ;;  %p984_p10 = scmp.ne.s32.totalorder %s691_s19, %s983_s20  ;;  %p989_p12 = scmp.lt.s32.totalorder %s983_s20, %s983_s20 }
  0x3c   :  { %835 = vmatprep.subr.bf16.mxu1 %v1016_v0  ;;  %838 = vmatprep.subr.bf16.mxu0 %v1016_v0  ;;  %v842_v36 = vpack.c.bf16 %v78_v35, %v77_v33  ;;  %v845_v39 = vpack.c.bf16 %v80_v38, %v79_v37  ;;  %v81_v40 = vld [vmem:[#allocation7 + $0x30] sm:$0xff]  ;;  %v82_v41 = vld [vmem:[#allocation7 + $0x38] sm:$0xff]  ;;  %v704_v48 = vld [vmem:[%s1225_s5] ss:$0 sm:$0xff] }
  0x3d   :  { %v848_v43 = vpack.c.bf16 %v82_v41, %v81_v40  ;;  %v85_v35 = vld [vmem:[%s1226_s6 + $0x8] sm:$0xff]  ;;  %v87_v38 = vld [vmem:[%s1226_s6 + $0x18] sm:$0xff]  ;;  %p990_p13 = por %p989_p12, %p988_p11 }
  0x3e   :  { %755 = vmatmul.mubr.msk.f32.vlgmr.msra.gmra.mrb[0].mxu0 %vm100_vm1, %v90_v11 }
  0x3f   :  { %837 = vmatpush3.bf16.msra.mxu1 %v836_v12  ;;  %784 = vmatprep.mubr.msk.f32.mxu0 %vm1017_vm0, %v1018_v1  ;;  %p991_p0 = pnand %p990_p13, %p984_p10 }
  0x40   :  { %850 = vmatprep.subr.bf16.mxu1 %v1016_v0  ;;  %840 = vmatpush3.bf16.msra.mxu0 %v839_v34 }
  0x41   :  { %841 = vmatprep.subr.bf16.mxu0 %v1016_v0 }
  0x42   :  { %766 = vmatmul.mubr.f32.vlgmr.msra.gmra.mrb[0].mxu1 %v1018_v1 }
  0x43   :  { %852 = vmatpush3.bf16.msra.mxu1 %v833_v8  ;;  %795 = vmatprep.mubr.msk.f32.mxu1 %vm1017_vm0, %v1018_v1 }
  0x44   :  { %853 = vmatprep.subr.bf16.mxu1 %v1016_v0  ;;  %843 = vmatpush3.bf16.msra.mxu0 %v842_v36 }
  0x45   :  { %844 = vmatprep.subr.bf16.mxu0 %v1016_v0 }
  0x47   :  { %855 = vmatpush3.bf16.msra.mxu1 %v836_v12 }
  0x48   :  { %856 = vmatprep.subr.bf16.mxu1 %v1016_v0  ;;  %846 = vmatpush3.bf16.msra.mxu0 %v845_v39 }
  0x49   :  { %847 = vmatprep.subr.bf16.mxu0 %v1016_v0 }
  0x4c   :  { %849 = vmatpush3.bf16.msra.mxu0 %v848_v43 }
  0x4d   :  { %868 = vmatprep.subr.bf16.mxu0 %v1016_v0 }
 0x111   :  { %v756_v14 = vpop.f32.mrb[0].mxu0 }
 0x112   :  { %v1149_v15 = vadd.f32 %v756_v14, %v700_v13  ;;  %v173_v16 = vpop.f32.mrb[1].mxu0 }
 0x113   :  { %v174_v17 = vadd.f32 %v700_v13, %v173_v16 }
 0x115   :  { %v252_v18 = vpop.f32.mrb[0].mxu1 }
 0x116   :  { %v256_v19 = vadd.f32 %v252_v18, %v174_v17  ;;  %v767_v20 = vpop.f32.mrb[1].mxu1 }
 0x118   :  { %885 = vtanh.f32 %v256_v19  ;;  %v703_v22 = vmul.f32 -1.442695, %v256_v19 }
 0x11a   :  { %887 = vpow2.f32 %v703_v22 }
 0x122   :  { %v886_v21 = vpop.eup %885 }
 0x123   :  { %266 = vrot.lane.b32.xlu0 %v886_v21, %s1019_s27 }
 0x124   :  { %v888_v23 = vpop.eup %887 }
 0x125   :  { %v260_v24 = vadd.f32 1.0, %v888_v23 }
 0x127   :  { %889 = vrcp.f32 %v260_v24 }
 0x131   :  { %v890_v25 = vpop.eup %889 }
 0x132   :  { %v264_v28 = vmul.f32 0.0, %v890_v25 }
 0x195   :  { %v267_v26 = vpop.permute.xlu0 %266 }
 0x196   :  { %v269_v27 = vmul.f32 %v890_v25, %v267_v26 }
 0x198   :  { %271 = vrot.lane.b32.xlu0 %v269_v27, %s1020_s3 }
 0x20a   :  { %v272_v29 = vpop.permute.xlu0 %271 }
 0x20b   :  { %v1153_v30 = vadd.f32 %v272_v29, %v264_v28 }
 0x20d   :  { %891 = vtanh.f32 %v1153_v30 }
 0x217   :  { %v892_v42 = vpop.eup %891 }
 0x218   :  { %277 = vrot.lane.b32.xlu1 %v892_v42, %s1019_s27 }
 0x28a   :  { %v278_v44 = vpop.permute.xlu1 %277 }
 0x28b   :  { %v280_v45 = vmul.f32 %v890_v25, %v278_v44 }
 0x28d   :  { %282 = vrot.lane.b32.xlu1 %v280_v45, %s1020_s3 }
 0x2ff   :  { %v283_v46 = vpop.permute.xlu1 %282 }
 0x300   :  { %v285_v47 = vsel %vm182_vm2, %v283_v46, 0.0  ;;  %796 = vmatmul.mubr.msk.f32.vlgmr.msra.gmra.mrb[2].mxu1 %vm182_vm2, %v283_v46 }
 0x301   :  { %785 = vmatmul.mubr.msk.f32.vlgmr.msra.gmra.mrb[2].mxu0 %vm292_vm3, %v285_v47  ;;  %858 = vmatpush3.bf16.msra.mxu1 %v839_v34  ;;  %v84_v34 = vld [vmem:[%s1226_s6] sm:$0xff] }
 0x302   :  { %859 = vmatprep.subr.bf16.mxu1 %v1016_v0  ;;  %814 = vmatprep.mubr.msk.f32.mxu1 %vm1017_vm0, %v1018_v1  ;;  %v869_v37 = vpack.c.bf16 %v85_v35, %v84_v34 }
 0x303   :  { %825 = vmatprep.mubr.msk.f32.mxu0 %vm1017_vm0, %v1018_v1 }
 0x304   :  { %870 = vmatpush3.bf16.msra.mxu0 %v869_v37 }
 0x305   :  { %861 = vmatpush3.bf16.msra.mxu1 %v842_v36  ;;  %v86_v36 = vld [vmem:[%s1226_s6 + $0x10] sm:$0xff]  ;;  %871 = vmatprep.subr.bf16.mxu0 %v1016_v0 }
 0x306   :  { %862 = vmatprep.subr.bf16.mxu1 %v1016_v0 }
 0x309   :  { %864 = vmatpush3.bf16.msra.mxu1 %v845_v39  ;;  %v872_v39 = vpack.c.bf16 %v87_v38, %v86_v36 }
 0x30a   :  { %865 = vmatprep.subr.bf16.mxu1 %v1016_v0  ;;  %v711_v0 = vld [vmem:[%s1227_s7] ss:$0 sm:$0xff] }
 0x30b   :  { %873 = vmatpush3.bf16.msra.mxu0 %v872_v39 }
 0x30d   :  { %867 = vmatpush3.bf16.msra.mxu1 %v848_v43 }
 0x3d3   :  { %v458_v49 = vpop.f32.mrb[2].mxu1 }
 0x3d4   :  { %v462_v50 = vadd.f32 %v458_v49, %v1149_v15  ;;  %v362_v51 = vpop.f32.mrb[2].mxu0  ;;  %v797_v52 = vpop.f32.mrb[3].mxu1 }
 0x3d5   :  { %v363_v53 = vadd.f32 %v704_v48, %v362_v51  ;;  %v786_v54 = vpop.f32.mrb[3].mxu0 }
 0x3d6   :  { %893 = vtanh.f32 %v462_v50  ;;  %v708_v57 = vmul.f32 -1.442695, %v462_v50 }
 0x3d7   :  { %895 = vtanh.f32 %v363_v53  ;;  %v706_v58 = vmul.f32 -1.442695, %v363_v53 }
 0x3d8   :  { %897 = vpow2.f32 %v708_v57 }
 0x3d9   :  { %899 = vpow2.f32 %v706_v58 }
 0x3e0   :  { %v894_v55 = vpop.eup %893 }
 0x3e1   :  { %v896_v56 = vpop.eup %895  ;;  %472 = vrot.lane.b32.xlu1 %v894_v55, %s1019_s27 }
 0x3e2   :  { %375 = vrot.lane.b32.xlu0 %v896_v56, %s1019_s27  ;;  %v898_v59 = vpop.eup %897 }
 0x3e3   :  { %v900_v60 = vpop.eup %899  ;;  %v466_v61 = vadd.f32 1.0, %v898_v59 }
 0x3e4   :  { %v369_v62 = vadd.f32 1.0, %v900_v60 }
 0x3e5   :  { %901 = vrcp.f32 %v466_v61 }
 0x3e6   :  { %903 = vrcp.f32 %v369_v62 }
 0x3ef   :  { %v902_v63 = vpop.eup %901 }
 0x3f0   :  { %v904_v2 = vpop.eup %903  ;;  %v470_v6 = vmul.f32 %v902_v63, %v1153_v30 }
 0x3f1   :  { %v373_v8 = vmul.f32 0.0, %v904_v2 }
 0x453   :  { %v473_v1 = vpop.permute.xlu1 %472 }
 0x454   :  { %v475_v3 = vmul.f32 %v902_v63, %v473_v1  ;;  %v376_v4 = vpop.permute.xlu0 %375 }
 0x455   :  { %v378_v5 = vmul.f32 %v904_v2, %v376_v4 }
 0x456   :  { %477 = vrot.lane.b32.xlu1 %v475_v3, %s1020_s3 }
 0x457   :  { %380 = vrot.lane.b32.xlu0 %v378_v5, %s1020_s3 }
 0x4c8   :  { %v478_v7 = vpop.permute.xlu1 %477 }
 0x4c9   :  { %v480_v9 = vadd.f32 %v478_v7, %v470_v6  ;;  %v381_v10 = vpop.permute.xlu0 %380 }
 0x4ca   :  { %v383_v11 = vadd.f32 %v381_v10, %v373_v8 }
 0x4cb   :  { %905 = vtanh.f32 %v480_v9 }
 0x4cc   :  { %907 = vtanh.f32 %v383_v11 }
 0x4d5   :  { %v906_v12 = vpop.eup %905 }
 0x4d6   :  { %v908_v13 = vpop.eup %907  ;;  %483 = vrot.lane.b32.xlu1 %v906_v12, %s1019_s27 }
 0x4d7   :  { %386 = vrot.lane.b32.xlu0 %v908_v13, %s1019_s27 }
 0x548   :  { %v484_v14 = vpop.permute.xlu1 %483 }
 0x549   :  { %v486_v15 = vmul.f32 %v902_v63, %v484_v14  ;;  %v387_v16 = vpop.permute.xlu0 %386 }
 0x54a   :  { %v389_v17 = vmul.f32 %v904_v2, %v387_v16 }
 0x54b   :  { %488 = vrot.lane.b32.xlu0 %v486_v15, %s1020_s3 }
 0x54c   :  { %492 = vrot.lane.b32.xlu1 %v389_v17, %s1019_s27  ;;  %v593_v43 = vrot.slane %v389_v17, 7 }
 0x5bd   :  { %v489_v18 = vpop.permute.xlu0 %488 }
 0x5be   :  { %v493_v19 = vpop.permute.xlu1 %492 }
 0x5bf   :  { %v495_v20 = vsel %vm182_vm2, %v489_v18, %v493_v19 }
 0x5c0   :  { %815 = vmatmul.mubr.msk.f32.vlgmr.msra.gmra.mrb[4].mxu1 %vm292_vm3, %v495_v20 }
 0x693   :  { %v565_v21 = vpop.f32.mrb[4].mxu1 }
 0x694   :  { %v566_v22 = vadd.f32 %v704_v48, %v565_v21  ;;  %v816_v23 = vpop.f32.mrb[5].mxu1 }
 0x696   :  { %909 = vtanh.f32 %v566_v22  ;;  %v710_v25 = vmul.f32 -1.442695, %v566_v22 }
 0x698   :  { %911 = vpow2.f32 %v710_v25 }
 0x6a0   :  { %v910_v24 = vpop.eup %909 }
 0x6a1   :  { %578 = vrot.lane.b32.xlu0 %v910_v24, %s1019_s27 }
 0x6a2   :  { %v912_v26 = vpop.eup %911 }
 0x6a3   :  { %v572_v27 = vadd.f32 1.0, %v912_v26 }
 0x6a5   :  { %913 = vrcp.f32 %v572_v27 }
 0x6af   :  { %v914_v28 = vpop.eup %913 }
 0x6b0   :  { %v576_v31 = vmul.f32 %v914_v28, %v383_v11 }
 0x713   :  { %v579_v29 = vpop.permute.xlu0 %578 }
 0x714   :  { %v581_v30 = vmul.f32 %v914_v28, %v579_v29 }
 0x716   :  { %583 = vrot.lane.b32.xlu1 %v581_v30, %s1020_s3 }
 0x788   :  { %v584_v32 = vpop.permute.xlu1 %583 }
 0x789   :  { %v586_v33 = vadd.f32 %v584_v32, %v576_v31 }
 0x78b   :  { %915 = vtanh.f32 %v586_v33 }
 0x795   :  { %v916_v40 = vpop.eup %915 }
 0x796   :  { %589 = vrot.lane.b32.xlu0 %v916_v40, %s1019_s27 }
 0x808   :  { %v590_v41 = vpop.permute.xlu0 %589 }
 0x809   :  { %v592_v42 = vmul.f32 %v914_v28, %v590_v41 }
 0x80b   :  { %v596_v44 = vrot.slane %v592_v42, 6 }
 0x80d   :  { %v599_v45 = vsel %vm598_vm4, %v593_v43, %v596_v44 }
 0x80e   :  { %v600_v46 = vmax.f32 %v599_v45, 0.0 }
 0x810   :  { %608 = vrot.lane.b32.xlu1 %v600_v46, %s1020_s3 }
 0x882   :  { %v609_v47 = vpop.permute.xlu1 %608 }
 0x883   :  { %826 = vmatmul.mubr.msk.f32.vlgmr.msra.gmra.mrb[4].mxu0 %vm182_vm2, %v609_v47 }
 0x956   :  { %v678_v48 = vpop.f32.mrb[4].mxu0 }
 0x957   :  { %v679_v49 = vadd.f32 %v711_v0, %v678_v48  ;;  %v827_v50 = vpop.f32.mrb[5].mxu0 }
 0x959   :  { %683 = vst.msk [vmem:[#allocation8] sm:$0x3] %vm682_vm5, %v679_v49 }
 0x95a   :  { %994 = shalt.err (!%p991_p0)
}
 0x95b   :  { %s995_s21 = scalar_lea.hbm %s1228_s8, 32 }
 0x95c   :  { %p996_p1 = scmp.ne.s32.totalorder %s1228_s8, %s995_s21  ;;  %p999_p2 = scmp.lt.u32.totalorder %s995_s21, %s1228_s8 }
 0x95e   :  { %p1001_p3 = pnand %p999_p2, %p996_p1 }
 0x960   :  { %1004 = shalt.err (!%p1001_p3)
}
 0x961   :  { %693 = dma.vmem_to_hbm [thread:$0]  %s691_s19, 32, %s1228_s8, [#allocation4]  }
 0x962   :  { %1009 = dma.done.wait [#allocation4], 32  }
 0x963   :  { %1010 = vsyncadd [#allocation4], 4294967264 }
 0x964   :  { %697 = vsyncpa [#allocation3], 1 }
 0x965   :  { %698 = vsyncpa [#allocation6], 1 }
 0x966   :  { %699 = vsyncpa [#allocation4], 1 }

</bundles_post_ra>
